<compile_context>
chip_gen: v7x
topology: tpu7x:2x2x1
jax: 0.10.0
libtpu: 0.0.40
codegen_flags: <defaults>
</compile_context>

<pallas_src>
import functools

import numpy as np
import jax
import jax.numpy as jnp
from jax import lax
from jax.experimental import pallas as pl
from jax.experimental.pallas import tpu as pltpu

DTYPE = jnp.float32
MXU_DTYPE = jnp.bfloat16
EPS = 1e-5


def _vmem():
    return pl.BlockSpec(memory_space=pltpu.MemorySpace.VMEM)


def _smem():
    return pl.BlockSpec(memory_space=pltpu.MemorySpace.SMEM)


# ----------------------------------------------------------------------------
# Host-side constant builders (interp matrix, tap shifts / masks, selectors)
# ----------------------------------------------------------------------------
def _interp_matrix(n_in, n_out):
    # align_corners=True bilinear interpolation matrix (n_out, n_in)
    m = np.zeros((n_out, n_in), dtype=np.float32)
    if n_in == 1 or n_out == 1:
        m[:, 0] = 1.0
        return m
    scale = (n_in - 1) / (n_out - 1)
    for o in range(n_out):
        src = o * scale
        i0 = min(int(np.floor(src)), n_in - 1)
        i1 = min(i0 + 1, n_in - 1)
        f = src - i0
        m[o, i0] += 1.0 - f
        m[o, i1] += f
    return m


def _upsample_matrix(h, w, ho, wo):
    # K[hw_in, hw_out] = Wh[ho,h] * Ww[wo,w];  U_flat = X_flat @ K.
    k2 = np.kron(_interp_matrix(h, ho), _interp_matrix(w, wo))   # (ho*wo, h*w)
    return jnp.asarray(k2.T.astype(np.float32))                  # (h*w, ho*wo)


def _tap_shifts(h, w, n_img):
    # Roll amounts over the batched (N*HW) lane axis so that for in-bounds taps
    # rolled[:, n*HW + j] == x[:, n*HW + j + (oh*w + ow)]; any out-of-bounds
    # position (including cross-image wrap) is zeroed by the tap mask.
    hw_total = n_img * h * w
    return [(-(oh * w + ow)) % hw_total for oh in (-1, 0, 1) for ow in (-1, 0, 1)]


def _tap_masks(h, w, n_img):
    # tapmask[k, n*HW + hh*w + ww] = 1 iff (hh+oh, ww+ow) is inside the image.
    m = np.zeros((9, h * w), np.float32)
    k = 0
    for oh in (-1, 0, 1):
        for ow in (-1, 0, 1):
            for hh in range(h):
                for ww in range(w):
                    if 0 <= hh + oh < h and 0 <= ww + ow < w:
                        m[k, hh * w + ww] = 1.0
            k += 1
    return jnp.asarray(np.tile(m, (1, n_img)))                   # (9, N*HW)


def _image_selector(n_img, hw):
    # sel[n, n*HW + j] = 1 : broadcasts per-image scalars to per-pixel lanes.
    return jnp.asarray(np.kron(np.eye(n_img, dtype=np.float32),
                               np.ones((1, hw), np.float32)))    # (N, N*HW)


def _conv_weight_im2col(w_hwio):
    # (3, 3, cin, cout) -> (cout, 9*cin); tap order kh-major, matching _tap_shifts.
    kh, kw, cin, cout = w_hwio.shape
    return jnp.transpose(w_hwio, (3, 0, 1, 2)).reshape(cout, kh * kw * cin)


def _block_diag(a, b):
    za = jnp.zeros((a.shape[0], b.shape[1]), a.dtype)
    zb = jnp.zeros((b.shape[0], a.shape[1]), b.dtype)
    return jnp.concatenate(
        [jnp.concatenate([a, za], axis=1), jnp.concatenate([zb, b], axis=1)], axis=0)


# ----------------------------------------------------------------------------
# In-kernel helper: batched im2col patches for a 3x3, pad=1 conv
# ----------------------------------------------------------------------------
def _patches3x3(x, tmask, shifts):
    # x: (cin, N*HW) f32; tmask: (9, N*HW); -> (9*cin, N*HW) bf16 for the MXU.
    taps = []
    for k, s in enumerate(shifts):
        shifted = x if s == 0 else pltpu.roll(x, shift=s, axis=1)
        taps.append(shifted * tmask[k:k + 1, :])
    return jnp.concatenate(taps, axis=0).astype(MXU_DTYPE)


# ----------------------------------------------------------------------------
# Kernels
# ----------------------------------------------------------------------------
def _upsample_kernel(hw_out, n_img, x_ref, k_ref, o_ref):
    # x: (N*C, HWin); k: (HWin, HWout); o: (C, N*HWout).  ONE matmul, then a
    # static per-image scatter into the (C, N*HW) canonical layout.
    y = jnp.dot(x_ref[...], k_ref[...], preferred_element_type=jnp.float32)
    c = o_ref.shape[0]
    for n in range(n_img):
        o_ref[:, n * hw_out:(n + 1) * hw_out] = (
            y[n * c:(n + 1) * c, :].astype(o_ref.dtype))


def _mask_branch_kernel(shifts, u_ref, tmask_ref, w1_ref, b1_ref,
                        gamma_ref, beta_ref, w2_ref, b2_ref, o_ref):
    # Fused MASK_PREDICTOR: conv3x3 -> BatchNorm2d (train stats over N*H*W)
    #                       -> ReLU -> 1x1 conv -> sigmoid.   Output (out, N*HW).
    tmask = tmask_ref[...]
    patches = _patches3x3(u_ref[...], tmask, shifts)                   # (9*icn, NHW)
    y = jnp.dot(w1_ref[...], patches,
                preferred_element_type=jnp.float32) + b1_ref[...]      # (hcn, NHW) f32

    mean = jnp.mean(y, axis=1, keepdims=True)                          # over N*H*W
    var = jnp.mean((y - mean) ** 2, axis=1, keepdims=True)
    scale = gamma_ref[...] * lax.rsqrt(var + EPS)
    shift = beta_ref[...] - mean * scale
    act = jnp.maximum(y * scale + shift, 0.0)

    z = jnp.dot(w2_ref[...], act.astype(MXU_DTYPE),
                preferred_element_type=jnp.float32) + b2_ref[...]      # (out, NHW)
    o_ref[...] = pl.reciprocal(1.0 + jnp.exp(-z)).astype(o_ref.dtype)  # exact sigmoid


def _sscbn_compute(shifts, x_ref, m_ref, t_ref, tmask_ref, sel_ref,
                   wa_ref, ba_ref, wb_ref, bb_ref, wc_ref, bc_ref):
    # SSCBN: BN(affine=False, train stats) + stacked gain/bias MLPs
    #        + spatial modulation by M + residual + ReLU + conv3x3.
    x = x_ref[...]                                                     # (cin, NHW) f32
    cin = x.shape[0]
    mean = jnp.mean(x, axis=1, keepdims=True)
    var = jnp.mean((x - mean) ** 2, axis=1, keepdims=True)
    xn = (x - mean) * lax.rsqrt(var + EPS)

    # Stacked MLPs (mlp_0 rows then mlp_1 rows): 2 dots instead of 4.
    h = jnp.maximum(
        jnp.dot(wa_ref[...], t_ref[...].astype(MXU_DTYPE),
                preferred_element_type=jnp.float32) + ba_ref[...], 0.0)   # (2*hdf, N)
    gb = jnp.dot(wb_ref[...], h.astype(MXU_DTYPE),
                 preferred_element_type=jnp.float32) + bb_ref[...]        # (2*cin, N)
    # Per-image -> per-pixel broadcast via one exact 0/1 selector matmul.
    gb_px = jnp.dot(gb, sel_ref[...], preferred_element_type=jnp.float32)  # (2cin,NHW)
    g_px = gb_px[:cin, :]
    b_px = gb_px[cin:, :]

    msk = m_ref[...]                                                   # (1, NHW)
    z = jnp.maximum(xn + g_px * (msk * xn) + b_px * msk, 0.0)          # relu(N + R)
    patches = _patches3x3(z, tmask_ref[...], shifts)                   # (9*cin, NHW)
    return jnp.dot(wc_ref[...], patches,
                   preferred_element_type=jnp.float32) + bc_ref[...]   # (cout, NHW)


def _sscbn_kernel(shifts, x_ref, m_ref, t_ref, tmask_ref, sel_ref,
                  wa_ref, ba_ref, wb_ref, bb_ref, wc_ref, bc_ref, o_ref):
    y = _sscbn_compute(shifts, x_ref, m_ref, t_ref, tmask_ref, sel_ref,
                       wa_ref, ba_ref, wb_ref, bb_ref, wc_ref, bc_ref)
    o_ref[...] = y.astype(o_ref.dtype)


def _sscbn_skip_kernel(shifts, x_ref, m_ref, t_ref, tmask_ref, sel_ref,
                       wa_ref, ba_ref, wb_ref, bb_ref, wc_ref, bc_ref,
                       u_ref, ws_ref, bs_ref, parm_ref, o_ref):
    # cbn2 fused with the SSACN combine: R = conv3x3(U) + parm * cbn2(...).
    y = _sscbn_compute(shifts, x_ref, m_ref, t_ref, tmask_ref, sel_ref,
                       wa_ref, ba_ref, wb_ref, bb_ref, wc_ref, bc_ref)
    up = _patches3x3(u_ref[...], tmask_ref[...], shifts)               # (9*icn, NHW)
    skip = jnp.dot(ws_ref[...], up,
                   preferred_element_type=jnp.float32) + bs_ref[...]   # (ocn, NHW)
    o_ref[...] = (skip + parm_ref[0] * y).astype(o_ref.dtype)


# ----------------------------------------------------------------------------
# Wrappers (weight repacking only; activations stay in the (C, N*HW) layout)
# ----------------------------------------------------------------------------
def upsample_bilinear_x2(x_nchw):
    n, c, h, w = x_nchw.shape
    ho, wo = 2 * h, 2 * w
    k = _upsample_matrix(h, w, ho, wo)                    # (h*w, ho*wo)
    x_flat = x_nchw.reshape(n * c, h * w)                 # contiguous -> free reshape
    kern = functools.partial(_upsample_kernel, ho * wo, n)
    return pl.pallas_call(
        kern,
        out_shape=jax.ShapeDtypeStruct((c, n * ho * wo), x_nchw.dtype),
        in_specs=[_vmem(), _vmem()],
        out_specs=_vmem(),
    )(x_flat, k)


def mask_branch(u, n, h, w, params):
    hw = h * w
    out = params["mask_w2"].shape[0]
    shifts = _tap_shifts(h, w, n)
    tmask = _tap_masks(h, w, n)
    w1 = _conv_weight_im2col(params["mask_w1"]).astype(MXU_DTYPE)
    w2 = params["mask_w2"].astype(MXU_DTYPE)
    kern = functools.partial(_mask_branch_kernel, shifts)
    return pl.pallas_call(
        kern,
        out_shape=jax.ShapeDtypeStruct((out, n * hw), u.dtype),
        in_specs=[_vmem()] * 8,
        out_specs=_vmem(),
    )(u, tmask, w1, params["mask_b1"], params["mask_gamma"],
      params["mask_beta"], w2, params["mask_b2"])


def sscbn_block(x, m, t, n, h, w, p, skip=None):
    hw = h * w
    cout = p["conv_b"].shape[0]
    shifts = _tap_shifts(h, w, n)
    tmask = _tap_masks(h, w, n)
    sel = _image_selector(n, hw)
    wa = jnp.concatenate([p["w0a"], p["w1a"]], axis=0).astype(MXU_DTYPE)   # (2hdf, tdf)
    ba = jnp.concatenate([p["b0a"], p["b1a"]], axis=0)                      # (2hdf, 1)
    wb = _block_diag(p["w0b"], p["w1b"]).astype(MXU_DTYPE)                  # (2cin, 2hdf)
    bb = jnp.concatenate([p["b0b"], p["b1b"]], axis=0)                      # (2cin, 1)
    wc = _conv_weight_im2col(p["conv_w"]).astype(MXU_DTYPE)                 # (cout, 9cin)
    args = [x, m, t, tmask, sel, wa, ba, wb, bb, wc, p["conv_b"]]
    in_specs = [_vmem()] * 11
    if skip is None:
        kern = functools.partial(_sscbn_kernel, shifts)
    else:
        u, skip_w, skip_b, parm = skip
        ws = _conv_weight_im2col(skip_w).astype(MXU_DTYPE)
        args += [u, ws, skip_b, parm]
        in_specs += [_vmem(), _vmem(), _vmem(), _smem()]
        kern = functools.partial(_sscbn_skip_kernel, shifts)
    return pl.pallas_call(
        kern,
        out_shape=jax.ShapeDtypeStruct((cout, n * hw), x.dtype),
        in_specs=in_specs,
        out_specs=_vmem(),
    )(*args)


# ----------------------------------------------------------------------------
# SSACN forward (4 pallas_calls)
# ----------------------------------------------------------------------------
def ssacn_forward(params, x_nchw, t_tdf_n):
    n, _, h_in, w_in = x_nchw.shape
    h, w = 2 * h_in, 2 * w_in                              # self.head: x2 upsample

    u = upsample_bilinear_x2(x_nchw)                       # (icn, N*H*W)
    m = mask_branch(u, n, h, w, params)                    # (out, N*H*W)
    y1 = sscbn_block(u, m, t_tdf_n, n, h, w, params["cbn1"])
    r = sscbn_block(y1, m, t_tdf_n, n, h, w, params["cbn2"],
                    skip=(u, params["conv_w"], params["conv_b"], params["parm"]))

    ocn = r.shape[0]
    out = m.shape[0]
    # Back to PyTorch NCHW (one tiny transpose at the output boundary only).
    r_nchw = r.reshape(ocn, n, h, w).transpose(1, 0, 2, 3)
    m_nchw = m.reshape(out, n, h, w).transpose(1, 0, 2, 3)
    return r_nchw, m_nchw


# ----------------------------------------------------------------------------
# Deterministic parameter init (synthetic; shapes follow the module __init__)
# ----------------------------------------------------------------------------
def init_params(key, icn, ocn, tdf, hdf, hcn, out):
    keys = iter(jax.random.split(key, 64))

    def rnd(shape, scale=0.1):
        return (scale * jax.random.normal(next(keys), shape)).astype(DTYPE)

    def sscbn(cin, cout):
        return dict(
            # nn.Linear layout: weight (out_features, in_features), bias as column.
            w0a=rnd((hdf, tdf)), b0a=rnd((hdf, 1)),
            w0b=rnd((cin, hdf)), b0b=rnd((cin, 1)),
            w1a=rnd((hdf, tdf)), b1a=rnd((hdf, 1)),
            w1b=rnd((cin, hdf)), b1b=rnd((cin, 1)),
            conv_w=rnd((3, 3, cin, cout)), conv_b=rnd((cout, 1)),
        )

    return dict(
        conv_w=rnd((3, 3, icn, ocn)), conv_b=rnd((ocn, 1)),
        mask_w1=rnd((3, 3, icn, hcn)), mask_b1=rnd((hcn, 1)),
        mask_gamma=jnp.ones((hcn, 1), DTYPE),
        mask_beta=jnp.zeros((hcn, 1), DTYPE),
        mask_w2=rnd((out, hcn)), mask_b2=rnd((out, 1)),
        cbn1=sscbn(icn, ocn),
        cbn2=sscbn(ocn, ocn),
        parm=jnp.zeros((1,), DTYPE),                 # nn.Parameter(th.zeros(1))
    )


if __name__ == "__main__":
    N, icn, ocn = 2, 4, 8
    H = W = 8                      # upsampled to 16x16 (N*H*W = 512 = 4 lane tiles)
    tdf, hdf, hcn, out = 8, 16, 16, 1

    key = jax.random.PRNGKey(0)
    kx, kt, kp = jax.random.split(key, 3)
    x = jax.random.normal(kx, (N, icn, H, W), DTYPE)        # NCHW like PyTorch
    t = jax.random.normal(kt, (tdf, N), DTYPE)              # transposed inside forward
    params = init_params(kp, icn, ocn, tdf, hdf, hcn, out)

    r, m = ssacn_forward(params, x, t)
    r, m = jax.block_until_ready((r, m))

    assert r.shape == (N, ocn, 2 * H, 2 * W), r.shape
    assert m.shape == (N, out, 2 * H, 2 * W), m.shape
    assert bool(jnp.isfinite(r).all()) and bool(jnp.isfinite(m).all())
    print("KERNEL_OK")
</pallas_src>

<mosaic_0001>
module attributes {stable_mosaic.version = 11 : i64} {
  func.func @_upsample_kernel(%arg0: memref<8x64xf32, #tpu.memory_space<vmem>>, %arg1: memref<64x256xf32, #tpu.memory_space<vmem>>, %arg2: memref<4x512xf32, #tpu.memory_space<vmem>>) attributes {dimension_semantics = [], scalar_prefetch = 0 : i64, scratch_operands = 0 : i64, tpu.core_type = #tpu.core_type<tc>} {
    %c0 = arith.constant 0 : index
    %c0_0 = arith.constant 0 : index
    %0 = vector.load %arg0[%c0, %c0_0] : memref<8x64xf32, #tpu.memory_space<vmem>>, vector<8x64xf32>
    %c0_1 = arith.constant 0 : index
    %c0_2 = arith.constant 0 : index
    %1 = vector.load %arg1[%c0_1, %c0_2] : memref<64x256xf32, #tpu.memory_space<vmem>>, vector<64x256xf32>
    %cst = arith.constant dense<0.000000e+00> : vector<8x256xf32>
    %2 = tpu.matmul %0, %1, %cst {dimension_numbers = #tpu.dot_dimension_numbers<[1], [0], [0], [1], [0, 0, 1, 1], [], []>} : vector<8x64xf32>, vector<64x256xf32>, vector<8x256xf32> -> vector<8x256xf32>
    %3 = vector.extract_strided_slice %2 {offsets = [0, 0], sizes = [4, 256], strides = [1, 1]} : vector<8x256xf32> to vector<4x256xf32>
    %c0_3 = arith.constant 0 : index
    %c0_4 = arith.constant 0 : index
    %4 = vector.load %arg2[%c0_3, %c0_4] : memref<4x512xf32, #tpu.memory_space<vmem>>, vector<4x256xf32>
    tpu.vector_store %arg2[%c0_3, %c0_4], %3 {strides = array<i32>} : memref<4x512xf32, #tpu.memory_space<vmem>>, vector<4x256xf32>,
    %5 = vector.extract_strided_slice %2 {offsets = [4, 0], sizes = [4, 256], strides = [1, 1]} : vector<8x256xf32> to vector<4x256xf32>
    %c0_5 = arith.constant 0 : index
    %c256 = arith.constant 256 : index
    %6 = vector.load %arg2[%c0_5, %c256] : memref<4x512xf32, #tpu.memory_space<vmem>>, vector<4x256xf32>
    tpu.vector_store %arg2[%c0_5, %c256], %5 {strides = array<i32>} : memref<4x512xf32, #tpu.memory_space<vmem>>, vector<4x256xf32>,
    return
  }
}

</mosaic_0001>

<bundles_post_ra>
// kernel: tpu_custom_call.1
= control target key start
LH: loop header
LB: loop body
LE: loop exit
PB: predicated region body
PF: predicated region fallthrough
CT: control target
= control target key end

     0   :  { %7 = vsyncpa [#allocation3], 0  ;;  %s313_s0 = inlined_call_operand.hbm [shape: f32[8,64], index: 0, kind: input, shape index: {}]   ;;  %s314_s1 = inlined_call_operand.hbm [shape: f32[64,256], index: 1, kind: input, shape index: {}]   ;;  %s315_s2 = inlined_call_operand.hbm [shape: f32[4,512], index: 2, kind: output, shape index: {}]  }
   0x1   :  { %8 = vsyncpa [#allocation6], 0 }
   0x2   :  { %9 = vsyncpa [#allocation4], 0  ;;  %s249_s9 = smov [#allocation2]   ;;  %s250_s11 = smov [#allocation5]  }
   0x3   :  { %s16_s10 = sshll.u32 %s249_s9, 4  ;;  %s25_s12 = sshll.u32 %s250_s11, 4  ;;  %s17_s10 = int_to_ptr.vmem [resolvable:$true] %s16_s10  ;;  %s270_s12 = int_to_ptr.vmem [resolvable:$true] %s25_s12 }
   0x4   :  { %s177_s15 = scalar_lea.hbm %s313_s0, 128 }
   0x5   :  { %p178_p0 = scmp.ne.s32.totalorder %s313_s0, %s177_s15  ;;  %p181_p1 = scmp.lt.u32.totalorder %s177_s15, %s313_s0 }
   0x7   :  { %p183_p2 = pnand %p181_p1, %p178_p0 }
   0x9   :  { %186 = shalt.err (!%p183_p2)
}
   0xa   :  { %s187_s20 = scalar_lea.vmem %s17_s10, 128  ;;  %p192_p4 = scmp.lt.s32.totalorder %s17_s10, %s17_s10 }
   0xb   :  { %p188_p3 = scmp.ne.s32.totalorder %s17_s10, %s187_s20  ;;  %p193_p5 = scmp.lt.s32.totalorder %s187_s20, %s187_s20 }
   0xd   :  { %p194_p6 = por %p193_p5, %p192_p4 }
   0xf   :  { %p195_p7 = pnand %p194_p6, %p188_p3 }
  0x11   :  { %198 = shalt.err (!%p195_p7)
}
  0x12   :  { %19 = dma.hbm_to_vmem [thread:$0]  %s313_s0, 128, %s17_s10, [#allocation3]  }
  0x13   :  { %s199_s25 = scalar_lea.hbm %s314_s1, 2048 }
  0x14   :  { %p200_p8 = scmp.ne.s32.totalorder %s314_s1, %s199_s25  ;;  %p203_p9 = scmp.lt.u32.totalorder %s199_s25, %s314_s1 }
  0x16   :  { %p205_p10 = pnand %p203_p9, %p200_p8 }
  0x18   :  { %208 = shalt.err (!%p205_p10)
}
  0x19   :  { %s209_s30 = scalar_lea.vmem %s270_s12, 2048  ;;  %p214_p12 = scmp.lt.s32.totalorder %s270_s12, %s270_s12 }
  0x1a   :  { %p210_p11 = scmp.ne.s32.totalorder %s270_s12, %s209_s30  ;;  %p215_p13 = scmp.lt.s32.totalorder %s209_s30, %s209_s30 }
  0x1c   :  { %p216_p0 = por %p215_p13, %p214_p12 }
  0x1e   :  { %p217_p1 = pnand %p216_p0, %p210_p11 }
  0x20   :  { %220 = shalt.err (!%p217_p1)
}
  0x21   :  { %s251_s0 = smov 256   ;;  %s252_s3 = smov 16  }
  0x22   :  { %31 = dma.hbm_to_vmem [thread:$0]  %s314_s1, 2048, %s270_s12, [#allocation6], %s251_s0, %s251_s0, %s252_s3  }
  0x23   :  { %243 = dma.done.wait [#allocation3], 128  }
  0x24   :  { %244 = vsyncadd [#allocation3], 4294967168 }
  0x25   :  { %245 = dma.done.wait [#allocation6], 2048  }
  0x26   :  { %246 = vsyncadd [#allocation6], 4294965248  ;;  %v253_v0 = vmov 0.0   ;;  %v40_v1 = vld [vmem:[#allocation5 + $0x8] sm:$0xff]  ;;  %v42_v2 = vld [vmem:[#allocation5 + $0x18] sm:$0xff]  ;;  %vm55_vm0 = vcmask 523264  }
  0x27   :  { %123 = vmatprep.mubr.f32.mxu0 %v253_v0  ;;  %v39_v3 = vld [vmem:[#allocation5] sm:$0xff]  ;;  %v155_v4 = vpack.c.bf16 %v42_v2, %v40_v1  ;;  %v41_v5 = vld [vmem:[#allocation5 + $0x10] sm:$0xff]  ;;  %v44_v6 = vld [vmem:[#allocation5 + $0x28] sm:$0xff]  ;;  %s254_s1 = smov [#allocation7]  }
  0x28   :  { %v46_v7 = vld [vmem:[#allocation5 + $0x38] sm:$0xff]  ;;  %v157_v8 = vpack.c.bf16 %v41_v5, %v39_v3  ;;  %v43_v10 = vld [vmem:[#allocation5 + $0x20] sm:$0xff]  ;;  %v45_v11 = vld [vmem:[#allocation5 + $0x30] sm:$0xff]  ;;  %s144_s6 = sshll.u32 %s254_s1, 4  ;;  %s145_s6 = int_to_ptr.vmem [resolvable:$true] %s144_s6 }
  0x29   :  { %v159_v9 = vpack.c.bf16 %v46_v7, %v44_v6  ;;  %v48_v12 = vld [vmem:[#allocation5 + $0x48] sm:$0xff]  ;;  %156 = vmatprep.subr.bf16.mxu0 %v155_v4  ;;  %v50_v13 = vld [vmem:[#allocation5 + $0x58] sm:$0xff]  ;;  %v161_v14 = vpack.c.bf16 %v45_v11, %v43_v10  ;;  %v47_v16 = vld [vmem:[#allocation5 + $0x40] sm:$0xff]  ;;  %s221_s7 = scalar_lea.vmem %s145_s6, 256  ;;  %p226_p3 = scmp.lt.s32.totalorder %s145_s6, %s145_s6 }
  0x2a   :  { %158 = vmatpush1.bf16.msra.mxu0 %v157_v8  ;;  %v163_v15 = vpack.c.bf16 %v50_v13, %v48_v12  ;;  %v49_v17 = vld [vmem:[#allocation5 + $0x50] sm:$0xff]  ;;  %v52_v18 = vld [vmem:[#allocation5 + $0x68] sm:$0xff]  ;;  %v54_v19 = vld [vmem:[#allocation5 + $0x78] sm:$0xff]  ;;  %p222_p2 = scmp.ne.s32.totalorder %s145_s6, %s221_s7  ;;  %p227_p4 = scmp.lt.s32.totalorder %s221_s7, %s221_s7 }
  0x2b   :  { %160 = vmatprep.subr.bf16.mxu0 %v159_v9  ;;  %v165_v20 = vpack.c.bf16 %v49_v17, %v47_v16  ;;  %v167_v21 = vpack.c.bf16 %v54_v19, %v52_v18  ;;  %v51_v22 = vld [vmem:[#allocation5 + $0x60] sm:$0xff]  ;;  %v53_v23 = vld [vmem:[#allocation5 + $0x70] sm:$0xff]  ;;  %v38_v25 = vld [vmem:[#allocation2] sm:$0xff] }
  0x2c   :  { %v169_v24 = vpack.c.bf16 %v53_v23, %v51_v22  ;;  %p228_p5 = por %p227_p4, %p226_p3 }
  0x2e   :  { %162 = vmatpush1.bf16.msra.mxu0 %v161_v14  ;;  %p229_p6 = pnand %p228_p5, %p222_p2 }
  0x2f   :  { %164 = vmatprep.subr.bf16.mxu0 %v163_v15 }
  0x32   :  { %166 = vmatpush1.bf16.msra.mxu0 %v165_v20 }
  0x33   :  { %168 = vmatprep.subr.bf16.mxu0 %v167_v21 }
  0x36   :  { %170 = vmatpush1.bf16.msra.mxu0 %v169_v24 }
  0x39   :  { %154 = vmatmul.mubr.msk.f32.vlgmr.msra.gmra.mrb[0].mxu0 %vm55_vm0, %v38_v25 }
 0x10c   :  { %v125_v26 = vpop.f32.mrb[0].mxu0 }
 0x10d   :  { %v127_v27 = vpop.f32.mrb[1].mxu0 }
 0x10e   :  { %v132_v28 = vcombine.low %v125_v26, %v127_v27  ;;  %v135_v29 = vcombine.high %v125_v26, %v127_v27 }
 0x110   :  { %134 = vst [vmem:[#allocation7] sm:$0xff] %v132_v28  ;;  %137 = vst [vmem:[#allocation7 + $0x8] sm:$0xff] %v135_v29 }
 0x111   :  { %232 = shalt.err (!%p229_p6)
}
 0x112   :  { %s233_s10 = scalar_lea.hbm %s315_s2, 256 }
 0x113   :  { %p234_p7 = scmp.ne.s32.totalorder %s315_s2, %s233_s10  ;;  %p237_p8 = scmp.lt.u32.totalorder %s233_s10, %s315_s2 }
 0x115   :  { %p239_p9 = pnand %p237_p8, %p234_p7 }
 0x117   :  { %242 = shalt.err (!%p239_p9)
}
 0x118   :  { %147 = dma.vmem_to_hbm [thread:$0]  %s145_s6, 256, %s315_s2, [#allocation4]  }
 0x119   :  { %247 = dma.done.wait [#allocation4], 256  }
 0x11a   :  { %248 = vsyncadd [#allocation4], 4294967040 }
 0x11b   :  { %151 = vsyncpa [#allocation3], 1 }
 0x11c   :  { %152 = vsyncpa [#allocation6], 1 }
 0x11d   :  { %153 = vsyncpa [#allocation4], 1 }

</bundles_post_ra>
